<compile_context>
chip_gen: v7x
topology: tpu7x:2x2x1
jax: 0.10.0
libtpu: 0.0.40
codegen_flags: <defaults>
</compile_context>

<pallas_src>
import functools
import math

import jax
import jax.numpy as jnp
from jax.experimental import pallas as pl
from jax.experimental.pallas import tpu as pltpu


# ---------------------------------------------------------------------------
# Kernel
# ---------------------------------------------------------------------------
def _mse_loss_kernel(x_ref, t_ref, loss_ref, *, inv_count):
    """Accumulate sum((x - t)^2) across the (reduction) grid axis.

    x_ref, t_ref : (block_rows, LANES) f32 tiles
    loss_ref     : (1, 1) f32, VMEM-resident across the whole grid
    """
    i = pl.program_id(0)

    @pl.when(i == 0)
    def _init():
        loss_ref[...] = jnp.zeros_like(loss_ref)

    d = x_ref[...] - t_ref[...]
    loss_ref[...] += jnp.sum(d * d)

    @pl.when(i == pl.num_programs(0) - 1)
    def _finalize():
        # Exact, precomputed 1/N (Python float baked in at trace time).
        loss_ref[...] *= inv_count


# ---------------------------------------------------------------------------
# Wrapper
# ---------------------------------------------------------------------------
_LANES = 512            # lane-dense blocks: multiple of 128, >= 512
_MAX_BLOCK_ROWS = 1024  # 1024 x 512 x 4B = 2 MiB/block; 2 in x 2 bufs = 8 MiB
                        # -> fits v7x 32 MiB scoped VMEM with headroom


def _round_up(x, m):
    return ((x + m - 1) // m) * m


def content_loss(x, target):
    """Equivalent of ContentLoss(target)(x): returns (x, mse_loss(x, target))."""
    assert x.shape == target.shape, "input and target must have the same shape"
    total = int(math.prod(x.shape))

    xf = jnp.ravel(x).astype(jnp.float32)
    tf = jnp.ravel(target).astype(jnp.float32)

    # Lay out as (rows, _LANES); pad with zeros (identical pad in both arrays
    # -> zero contribution to the squared-difference sum).
    rows = pl.cdiv(total, _LANES)
    block_rows = min(_MAX_BLOCK_ROWS, _round_up(rows, 8))
    padded_rows = _round_up(rows, block_rows)
    pad = padded_rows * _LANES - total
    if pad:
        xf = jnp.pad(xf, (0, pad))
        tf = jnp.pad(tf, (0, pad))
    x2 = xf.reshape(padded_rows, _LANES)
    t2 = tf.reshape(padded_rows, _LANES)

    grid = (padded_rows // block_rows,)

    loss = pl.pallas_call(
        functools.partial(_mse_loss_kernel, inv_count=1.0 / total),
        out_shape=jax.ShapeDtypeStruct((1, 1), jnp.float32),
        grid=grid,
        in_specs=[
            pl.BlockSpec((block_rows, _LANES), lambda i: (i, 0)),
            pl.BlockSpec((block_rows, _LANES), lambda i: (i, 0)),
        ],
        # Output stays VMEM-resident across the whole (reduction) grid.
        out_specs=pl.BlockSpec((1, 1), lambda i: (0, 0)),
        compiler_params=pltpu.CompilerParams(
            # Single grid axis is a reduction into one accumulator -> arbitrary.
            dimension_semantics=("arbitrary",),
            vmem_limit_bytes=32 * 1024 * 1024,
        ),
    )(x2, t2)

    # PyTorch forward returns the input unchanged (pass-through, no copy).
    return x, loss[0, 0]


# ---------------------------------------------------------------------------
# Test
# ---------------------------------------------------------------------------
if __name__ == "__main__":
    key = jax.random.PRNGKey(0)
    k1, k2 = jax.random.split(key)

    N, C, H, W = 2, 4, 16, 16
    x = jax.random.uniform(k1, (N, C, H, W), dtype=jnp.float32)
    target = jax.random.uniform(k2, (N, C, H, W), dtype=jnp.float32)

    out, loss = content_loss(x, target)
    out = jax.block_until_ready(out)
    loss = jax.block_until_ready(loss)

    # Reference (mirrors nn.functional.mse_loss with default 'mean' reduction).
    ref_loss = jnp.mean((x - target) ** 2)

    assert out.shape == x.shape
    assert jnp.allclose(out, x)                       # forward returns input
    assert jnp.allclose(loss, ref_loss, rtol=1e-5, atol=1e-7)

    print("KERNEL_OK")
</pallas_src>

<mosaic_0001>
module attributes {stable_mosaic.version = 11 : i64} {
  func.func @_mse_loss_kernel(%arg0: i32, %arg1: memref<8x512xf32, #tpu.memory_space<vmem>>, %arg2: memref<8x512xf32, #tpu.memory_space<vmem>>, %arg3: memref<1x1xf32, #tpu.memory_space<vmem>>) attributes {dimension_semantics = [#tpu.dimension_semantics<arbitrary>], iteration_bounds = array<i64: 1>, scalar_prefetch = 0 : i64, scratch_operands = 0 : i64, tpu.core_type = #tpu.core_type<tc>, window_params = [{transform_indices = @transform_0, window_bounds = array<i64: 8, 512>}, {transform_indices = @transform_1, window_bounds = array<i64: 8, 512>}, {pipeline_mode = #tpu.pipeline_mode<synchronous>, transform_indices = @transform_2, window_bounds = array<i64: 1, 1>}]} {
    %c0_i32 = arith.constant 0 : i32
    %0 = arith.cmpi eq, %arg0, %c0_i32 : i32
    %1 = arith.extui %0 : i1 to i32
    %c0_i32_0 = arith.constant 0 : i32
    %2 = arith.cmpi ne, %1, %c0_i32_0 : i32
    scf.if %2 {
      %cst_10 = arith.constant 0.000000e+00 : f32
      %18 = vector.broadcast %cst_10 : f32 to vector<1x1xf32>
      %c0_11 = arith.constant 0 : index
      %c0_12 = arith.constant 0 : index
      %19 = vector.load %arg3[%c0_11, %c0_12] : memref<1x1xf32, #tpu.memory_space<vmem>>, vector<1x1xf32>
      tpu.vector_store %arg3[%c0_11, %c0_12], %18 {strides = array<i32>} : memref<1x1xf32, #tpu.memory_space<vmem>>, vector<1x1xf32>,
    } else {
    }
    %c0 = arith.constant 0 : index
    %c0_1 = arith.constant 0 : index
    %3 = vector.load %arg1[%c0, %c0_1] : memref<8x512xf32, #tpu.memory_space<vmem>>, vector<8x512xf32>
    %c0_2 = arith.constant 0 : index
    %c0_3 = arith.constant 0 : index
    %4 = vector.load %arg2[%c0_2, %c0_3] : memref<8x512xf32, #tpu.memory_space<vmem>>, vector<8x512xf32>
    %5 = arith.subf %3, %4 : vector<8x512xf32>
    %c0_4 = arith.constant 0 : index
    %c0_5 = arith.constant 0 : index
    %6 = vector.load %arg3[%c0_4, %c0_5] : memref<1x1xf32, #tpu.memory_space<vmem>>, vector<1x1xf32>
    %7 = arith.mulf %5, %5 : vector<8x512xf32>
    %8 = vector.shape_cast %7 : vector<8x512xf32> to vector<1x8x512xf32>
    %cst = arith.constant dense<0.000000e+00> : vector<1xf32>
    %9 = vector.multi_reduction <add>, %8, %cst [1, 2] : vector<1x8x512xf32> to vector<1xf32>
    %10 = vector.shape_cast %9 : vector<1xf32> to vector<1x1x1xf32>
    %11 = vector.extract %10[0, 0, 0] : f32 from vector<1x1x1xf32>
    %12 = vector.broadcast %11 : f32 to vector<1x1xf32>
    %13 = arith.addf %6, %12 : vector<1x1xf32>
    %c0_6 = arith.constant 0 : index
    %c0_7 = arith.constant 0 : index
    %14 = vector.load %arg3[%c0_6, %c0_7] : memref<1x1xf32, #tpu.memory_space<vmem>>, vector<1x1xf32>
    tpu.vector_store %arg3[%c0_6, %c0_7], %13 {strides = array<i32>} : memref<1x1xf32, #tpu.memory_space<vmem>>, vector<1x1xf32>,
    %c0_i32_8 = arith.constant 0 : i32
    %15 = arith.cmpi eq, %arg0, %c0_i32_8 : i32
    %16 = arith.extui %15 : i1 to i32
    %c0_i32_9 = arith.constant 0 : i32
    %17 = arith.cmpi ne, %16, %c0_i32_9 : i32
    scf.if %17 {
      %c0_10 = arith.constant 0 : index
      %c0_11 = arith.constant 0 : index
      %18 = vector.load %arg3[%c0_10, %c0_11] : memref<1x1xf32, #tpu.memory_space<vmem>>, vector<1x1xf32>
      %cst_12 = arith.constant 4.8828125E-4 : f32
      %19 = vector.broadcast %cst_12 : f32 to vector<1x1xf32>
      %20 = arith.mulf %18, %19 : vector<1x1xf32>
      %c0_13 = arith.constant 0 : index
      %c0_14 = arith.constant 0 : index
      %21 = vector.load %arg3[%c0_13, %c0_14] : memref<1x1xf32, #tpu.memory_space<vmem>>, vector<1x1xf32>
      tpu.vector_store %arg3[%c0_13, %c0_14], %20 {strides = array<i32>} : memref<1x1xf32, #tpu.memory_space<vmem>>, vector<1x1xf32>,
    } else {
    }
    return
  }
  func.func @transform_0(%arg0: i32) -> (i32, i32) {
    %c0_i32 = arith.constant 0 : i32
    %c0_i32_0 = arith.constant 0 : i32
    return %arg0, %c0_i32 : i32, i32
  }
  func.func @transform_1(%arg0: i32) -> (i32, i32) {
    %c0_i32 = arith.constant 0 : i32
    %c0_i32_0 = arith.constant 0 : i32
    return %arg0, %c0_i32 : i32, i32
  }
  func.func @transform_2(%arg0: i32) -> (i32, i32) {
    %c0_i32 = arith.constant 0 : i32
    %c0_i32_0 = arith.constant 0 : i32
    %c0_i32_1 = arith.constant 0 : i32
    return %c0_i32, %c0_i32_0 : i32, i32
  }
}

</mosaic_0001>

<bundles_post_ra>
// kernel: tpu_custom_call.1
= control target key start
LH: loop header
LB: loop body
LE: loop exit
PB: predicated region body
PF: predicated region fallthrough
CT: control target
= control target key end

     0   :  { %7 = vsyncpa [#allocation3], 0  ;;  %s233_s0 = inlined_call_operand.hbm [shape: f32[8,512], index: 0, kind: input, shape index: {}]   ;;  %s234_s1 = inlined_call_operand.hbm [shape: f32[8,512], index: 1, kind: input, shape index: {}]   ;;  %s235_s2 = inlined_call_operand.hbm [shape: f32[1,1], index: 2, kind: output, shape index: {}]  }
   0x1   :  { %8 = vsyncpa [#allocation6], 0 }
   0x2   :  { %9 = vsyncpa [#allocation4], 0  ;;  %s175_s9 = smov [#allocation2]   ;;  %s176_s11 = smov [#allocation5]  }
   0x3   :  { %s16_s10 = sshll.u32 %s175_s9, 4  ;;  %s26_s12 = sshll.u32 %s176_s11, 4  ;;  %s17_s10 = int_to_ptr.vmem [resolvable:$true] %s16_s10  ;;  %s27_s12 = int_to_ptr.vmem [resolvable:$true] %s26_s12 }
   0x4   :  { %s103_s15 = scalar_lea.hbm %s233_s0, 512 }
   0x5   :  { %p104_p0 = scmp.ne.s32.totalorder %s233_s0, %s103_s15  ;;  %p107_p1 = scmp.lt.u32.totalorder %s103_s15, %s233_s0 }
   0x7   :  { %p109_p2 = pnand %p107_p1, %p104_p0 }
   0x9   :  { %112 = shalt.err (!%p109_p2)
}
   0xa   :  { %s113_s20 = scalar_lea.vmem %s17_s10, 512  ;;  %p118_p4 = scmp.lt.s32.totalorder %s17_s10, %s17_s10 }
   0xb   :  { %p114_p3 = scmp.ne.s32.totalorder %s17_s10, %s113_s20  ;;  %p119_p5 = scmp.lt.s32.totalorder %s113_s20, %s113_s20 }
   0xd   :  { %p120_p6 = por %p119_p5, %p118_p4 }
   0xf   :  { %p121_p7 = pnand %p120_p6, %p114_p3 }
  0x11   :  { %124 = shalt.err (!%p121_p7)
}
  0x12   :  { %19 = dma.hbm_to_vmem [thread:$0]  %s233_s0, 512, %s17_s10, [#allocation3]  }
  0x13   :  { %s125_s25 = scalar_lea.hbm %s234_s1, 512 }
  0x14   :  { %p126_p8 = scmp.ne.s32.totalorder %s234_s1, %s125_s25  ;;  %p129_p9 = scmp.lt.u32.totalorder %s125_s25, %s234_s1 }
  0x16   :  { %p131_p10 = pnand %p129_p9, %p126_p8 }
  0x18   :  { %134 = shalt.err (!%p131_p10)
}
  0x19   :  { %s135_s30 = scalar_lea.vmem %s27_s12, 512  ;;  %p140_p12 = scmp.lt.s32.totalorder %s27_s12, %s27_s12 }
  0x1a   :  { %p136_p11 = scmp.ne.s32.totalorder %s27_s12, %s135_s30  ;;  %p141_p13 = scmp.lt.s32.totalorder %s135_s30, %s135_s30 }
  0x1c   :  { %p142_p0 = por %p141_p13, %p140_p12 }
  0x1e   :  { %p143_p1 = pnand %p142_p0, %p136_p11 }
  0x20   :  { %146 = shalt.err (!%p143_p1)
}
  0x21   :  { %29 = dma.hbm_to_vmem [thread:$0]  %s234_s1, 512, %s27_s12, [#allocation6]  }
  0x22   :  { %169 = dma.done.wait [#allocation3], 512  }
  0x23   :  { %170 = vsyncadd [#allocation3], 4294966784 }
  0x24   :  { %171 = dma.done.wait [#allocation6], 512  }
  0x25   :  { %172 = vsyncadd [#allocation6], 4294966784  ;;  %v42_v0 = vld [vmem:[#allocation2] sm:$0xff]  ;;  %v43_v1 = vld [vmem:[#allocation2 + $0x8] sm:$0xff]  ;;  %vm40_vm0 = vcmask 0   ;;  %v177_v19 = vmov 0.0  }
  0x26   :  { %v44_v2 = vld [vmem:[#allocation2 + $0x10] sm:$0xff]  ;;  %v45_v3 = vld [vmem:[#allocation2 + $0x18] sm:$0xff]  ;;  %v46_v4 = vld [vmem:[#allocation5] sm:$0xff]  ;;  %41 = vst.msk [vmem:[#allocation7] sm:$0x1] %vm40_vm0, %v177_v19  ;;  %s178_s4 = smov [#allocation7]  }
  0x27   :  { %v47_v5 = vld [vmem:[#allocation5 + $0x8] sm:$0xff]  ;;  %v48_v6 = vld [vmem:[#allocation5 + $0x10] sm:$0xff]  ;;  %v49_v7 = vld [vmem:[#allocation5 + $0x18] sm:$0xff]  ;;  %v50_v8 = vsub.f32 %v42_v0, %v46_v4  ;;  %s87_s5 = sshll.u32 %s178_s4, 4  ;;  %s88_s5 = int_to_ptr.vmem [resolvable:$true] %s87_s5 }
  0x28   :  { %v51_v9 = vsub.f32 %v43_v1, %v47_v5  ;;  %v52_v10 = vsub.f32 %v44_v2, %v48_v6  ;;  %v53_v11 = vsub.f32 %v45_v3, %v49_v7  ;;  %s147_s6 = scalar_lea.vmem %s88_s5, 16  ;;  %s151_s7 = scalar_lea.vmem %s88_s5, 32 }
  0x29   :  { %v55_v12 = vmul.f32 %v50_v8, %v50_v8  ;;  %p148_p2 = scmp.ne.s32.totalorder %s88_s5, %s147_s6  ;;  %p152_p3 = scmp.lt.s32.totalorder %s88_s5, %s88_s5 }
  0x2a   :  { %v56_v13 = vmul.f32 %v51_v9, %v51_v9  ;;  %v57_v14 = vmul.f32 %v52_v10, %v52_v10  ;;  %v58_v15 = vmul.f32 %v53_v11, %v53_v11  ;;  %p153_p4 = scmp.lt.s32.totalorder %s151_s7, %s147_s6 }
  0x2c   :  { %v59_v16 = vadd.f32 %v56_v13, %v55_v12  ;;  %p154_p5 = por %p153_p4, %p152_p3 }
  0x2d   :  { %v54_v27 = vld [vmem:[#allocation7] sm:$0x1] }
  0x2e   :  { %v60_v17 = vadd.f32 %v59_v16, %v57_v14  ;;  %p155_p6 = pnand %p154_p5, %p148_p2 }
  0x30   :  { %v61_v18 = vadd.f32 %v60_v17, %v58_v15 }
  0x32   :  { %62 = vadd.xlane.f32.xlu0 %v61_v18 }
  0xbf   :  { %v63_v20 = vpop.xlane.xlu0 %62 }
  0xc0   :  { %v64_v21 = vrot.slane %v63_v20, 4 }
  0xc2   :  { %v65_v22 = vadd.f32 %v64_v21, %v63_v20 }
  0xc4   :  { %v66_v23 = vrot.slane %v65_v22, 2 }
  0xc6   :  { %v67_v24 = vadd.f32 %v66_v23, %v65_v22 }
  0xc8   :  { %v68_v25 = vrot.slane %v67_v24, 1 }
  0xca   :  { %v69_v26 = vadd.f32 %v68_v25, %v67_v24 }
  0xcc   :  { %97 = vpush %v69_v26 }
  0xfd   :  { %s98_s1 = spop %97 }
  0xfe   :  { %v71_v28 = vstv %s98_s1 }
  0xff   :  { %v72_v29 = vadd.f32 %v71_v28, %v54_v27 }
 0x101   :  { %74 = vst.msk [vmem:[#allocation7] sm:$0x1] %vm40_vm0, %v72_v29 }
 0x108   :  { %v78_v30 = vld [vmem:[#allocation7] sm:$0x1] }
 0x109   :  { %v79_v31 = vmul.f32 0.00048828125, %v78_v30 }
 0x10b   :  { %80 = vst.msk [vmem:[#allocation7] sm:$0x1] %vm40_vm0, %v79_v31 }
 0x10c   :  { %158 = shalt.err (!%p155_p6)
}
 0x10d   :  { %s159_s10 = scalar_lea.hbm %s235_s2, 16 }
 0x10e   :  { %p160_p7 = scmp.ne.s32.totalorder %s235_s2, %s159_s10  ;;  %p163_p8 = scmp.lt.u32.totalorder %s159_s10, %s235_s2 }
 0x110   :  { %p165_p9 = pnand %p163_p8, %p160_p7 }
 0x112   :  { %168 = shalt.err (!%p165_p9)
}
 0x113   :  { %90 = dma.vmem_to_hbm [thread:$0]  %s88_s5, 16, %s235_s2, [#allocation4]  }
 0x114   :  { %173 = dma.done.wait [#allocation4], 16  }
 0x115   :  { %174 = vsyncadd [#allocation4], 4294967280 }
 0x116   :  { %94 = vsyncpa [#allocation3], 1 }
 0x117   :  { %95 = vsyncpa [#allocation6], 1 }
 0x118   :  { %96 = vsyncpa [#allocation4], 1 }

</bundles_post_ra>
